<compile_context>
chip_gen: v7x
topology: tpu7x:2x2x1
jax: 0.10.0
libtpu: 0.0.40
codegen_flags: <defaults>
</compile_context>

<pallas_src>
import jax
import jax.numpy as jnp
from jax.experimental import pallas as pl
from jax.experimental.pallas import tpu as pltpu


_SQRT_HALF = 0.7071067811865476
_PACK = 2  # examples packed per kernel row; 2*out_ch(=64) = 128 lane-dense output


def _gelu_exact(x):
    # Matches torch.nn.GELU() (exact erf formulation).
    return 0.5 * x * (1.0 + jax.lax.erf(x * _SQRT_HALF))


def _round_up(x, m):
    return ((x + m - 1) // m) * m


def palette_encoder_kernel(x_ref, w1_ref, b1_ref, w2_ref, b2_ref, o_ref):
    """One batch tile, exactly two full-size MXU matmuls.

    x_ref : (tb, PACK*nc*in_ch)            2 flattened palettes per row
    w1_ref: (PACK*nc*in_ch, PACK*nc*hid)   block-diagonal W1 (kron(I, W1))
    b1_ref: (1, PACK*nc*hid)               tiled bias
    w2_ref: (PACK*nc*hid, PACK*out_ch)     block-diagonal W2 (kron(I2, W2))
    b2_ref: (1, PACK*out_ch)
    o_ref : (tb, PACK*out_ch)              lane-dense (128-wide) output
    """
    # Layer 1 for all colors of both packed examples in one matmul (f32 acc).
    h = jnp.dot(x_ref[...], w1_ref[...], preferred_element_type=jnp.float32)
    h = _gelu_exact(h + b1_ref[...])          # already in torch Flatten order
    # Layer 2 for both packed examples in one matmul; bias added once.
    y = jnp.dot(h, w2_ref[...], preferred_element_type=jnp.float32) + b2_ref[...]
    o_ref[...] = _gelu_exact(y).astype(o_ref.dtype)


def palette_encoder(x, w1, b1, w2, b2, n_colors, block_b=1024):
    """x: (B, n_colors, in_ch); w1: (in_ch, hid); b1: (hid,);
    w2: (n_colors*hid, out_ch); b2: (out_ch,).  Weights are torch weight.T."""
    B, nc, in_ch = x.shape
    assert nc == n_colors
    hid = w1.shape[1]
    out_ch = w2.shape[1]
    p = _PACK

    # ---- layout plumbing (wrapper / XLA side; kernel sees only 2-D operands) ----
    x_flat = x.reshape(B, nc * in_ch)
    if B % p:
        # Odd batch: pad a single zero row so exactly 2 examples pack per kernel
        # row (rare edge case; tail is sliced off after the kernel).
        x_flat = jnp.pad(x_flat, ((0, p - B % p), (0, 0)))
    Bh = x_flat.shape[0] // p
    x_pack = x_flat.reshape(Bh, p * nc * in_ch)          # free row-major view

    # Block-diagonal replication of W1: kron with an identity (0/1 entries) is
    # numerically exact; layer 1 for every (example-in-pack, color) runs as one
    # matmul whose output column order equals torch's Flatten order.
    w1_pack = jnp.kron(jnp.eye(p * nc, dtype=w1.dtype), w1)   # (p*nc*in, p*nc*hid)
    b1_pack = jnp.tile(b1, p * nc).reshape(1, p * nc * hid)
    # Block-diagonal replication of W2 so both packed examples share one matmul.
    w2_pack = jnp.kron(jnp.eye(p, dtype=w2.dtype), w2)        # (p*nc*hid, p*out)
    b2_pack = jnp.tile(b2, p).reshape(1, p * out_ch)

    # ---- batch tiling ----
    if Bh <= 16:
        tb = Bh                                  # single tiny full-extent block
    else:
        # >=2 grid steps so v7x megacore can split the batch; cap at block_b.
        # No wrapper pad needed: Pallas clips the partial final block, and all
        # kernel ops are row-independent.
        tb = min(block_b, _round_up(pl.cdiv(Bh, 2), 8))
    grid = pl.cdiv(Bh, tb)

    # VMEM at the default block_b=1024: double-buffered x/out tiles + f32 h
    # intermediate total ~3-4 MiB -- comfortably inside default scoped VMEM on
    # v5e/v6e/v7x.  Raise vmem_limit_bytes if block_b is pushed above ~4096
    # (v7x) / ~8192 (v5e/v6e).
    out = pl.pallas_call(
        palette_encoder_kernel,
        out_shape=jax.ShapeDtypeStruct((Bh, p * out_ch), x.dtype),
        grid_spec=pltpu.PrefetchScalarGridSpec(
            num_scalar_prefetch=0,
            grid=(grid,),
            in_specs=[
                pl.BlockSpec((tb, p * nc * in_ch), lambda i: (i, 0)),
                pl.BlockSpec((p * nc * in_ch, p * nc * hid), lambda i: (0, 0)),
                pl.BlockSpec((1, p * nc * hid), lambda i: (0, 0)),
                pl.BlockSpec((p * nc * hid, p * out_ch), lambda i: (0, 0)),
                pl.BlockSpec((1, p * out_ch), lambda i: (0, 0)),
            ],
            out_specs=pl.BlockSpec((tb, p * out_ch), lambda i: (i, 0)),
        ),
        compiler_params=pltpu.CompilerParams(
            dimension_semantics=("parallel",)),
    )(x_pack, w1_pack, b1_pack, w2_pack, b2_pack)

    # (Bh, p*out_ch) -> (p*Bh, out_ch) is a free row-major view; drop pad rows.
    return out.reshape(Bh * p, out_ch)[:B]


def palette_encoder_ref(x, w1, b1, w2, b2):
    """Pure-JAX reference mirroring the PyTorch module."""
    h = _gelu_exact(jnp.einsum("bci,ih->bch", x, w1) + b1)
    f = h.reshape(x.shape[0], -1)
    return _gelu_exact(f @ w2 + b2)


if __name__ == "__main__":
    # Shapes implied by the module: palette of n_colors RGB colors per example.
    B, n_colors, in_ch = 2, 5, 3
    hid_ch, out_ch = 32, 64

    key = jax.random.PRNGKey(0)
    k_x, k_w1, k_b1, k_w2, k_b2 = jax.random.split(key, 5)

    x = jax.random.uniform(k_x, (B, n_colors, in_ch), dtype=jnp.float32)
    # deterministic synthetic parameters (stored as (in, out), i.e. torch weight.T)
    w1 = 0.1 * jax.random.normal(k_w1, (in_ch, hid_ch), dtype=jnp.float32)
    b1 = 0.1 * jax.random.normal(k_b1, (hid_ch,), dtype=jnp.float32)
    w2 = 0.1 * jax.random.normal(k_w2, (hid_ch * n_colors, out_ch), dtype=jnp.float32)
    b2 = 0.1 * jax.random.normal(k_b2, (out_ch,), dtype=jnp.float32)

    # Small-batch path (single grid point, full-extent block).
    y = jax.block_until_ready(palette_encoder(x, w1, b1, w2, b2, n_colors))
    y_ref = palette_encoder_ref(x, w1, b1, w2, b2)
    assert y.shape == (B, out_ch)
    assert jnp.allclose(y, y_ref, atol=1e-5, rtol=1e-5), "mismatch vs reference (B=2)"

    # Larger even batch: 2-step grid (megacore split) with a partial final block.
    B2 = 600
    x2 = jax.random.uniform(jax.random.PRNGKey(1), (B2, n_colors, in_ch),
                            dtype=jnp.float32)
    y2 = jax.block_until_ready(palette_encoder(x2, w1, b1, w2, b2, n_colors))
    y2_ref = palette_encoder_ref(x2, w1, b1, w2, b2)
    assert y2.shape == (B2, out_ch)
    assert jnp.allclose(y2, y2_ref, atol=1e-5, rtol=1e-5), "mismatch vs reference (B=600)"

    # Odd batch exercises the 1-row pack pad + partial-block path.
    B3 = 257
    x3 = jax.random.uniform(jax.random.PRNGKey(2), (B3, n_colors, in_ch),
                            dtype=jnp.float32)
    y3 = jax.block_until_ready(palette_encoder(x3, w1, b1, w2, b2, n_colors))
    y3_ref = palette_encoder_ref(x3, w1, b1, w2, b2)
    assert y3.shape == (B3, out_ch)
    assert jnp.allclose(y3, y3_ref, atol=1e-5, rtol=1e-5), "mismatch vs reference (B=257)"

    print("KERNEL_OK")
</pallas_src>

<mosaic_0001>
module attributes {stable_mosaic.version = 11 : i64} {
  func.func @palette_encoder_kernel(%arg0: i32, %arg1: memref<1x30xf32, #tpu.memory_space<vmem>>, %arg2: memref<30x320xf32, #tpu.memory_space<vmem>>, %arg3: memref<1x320xf32, #tpu.memory_space<vmem>>, %arg4: memref<320x128xf32, #tpu.memory_space<vmem>>, %arg5: memref<1x128xf32, #tpu.memory_space<vmem>>, %arg6: memref<1x128xf32, #tpu.memory_space<vmem>>) attributes {dimension_semantics = [#tpu.dimension_semantics<parallel>], iteration_bounds = array<i64: 1>, scalar_prefetch = 0 : i64, scratch_operands = 0 : i64, tpu.core_type = #tpu.core_type<tc>, window_params = [{transform_indices = @transform_0, window_bounds = array<i64: 1, 30>}, {pipeline_mode = #tpu.pipeline_mode<synchronous>, transform_indices = @transform_1, window_bounds = array<i64: 30, 320>}, {pipeline_mode = #tpu.pipeline_mode<synchronous>, transform_indices = @transform_2, window_bounds = array<i64: 1, 320>}, {pipeline_mode = #tpu.pipeline_mode<synchronous>, transform_indices = @transform_3, window_bounds = array<i64: 320, 128>}, {pipeline_mode = #tpu.pipeline_mode<synchronous>, transform_indices = @transform_4, window_bounds = array<i64: 1, 128>}, {transform_indices = @transform_5, window_bounds = array<i64: 1, 128>}]} {
    %c0 = arith.constant 0 : index
    %c0_0 = arith.constant 0 : index
    %0 = vector.load %arg1[%c0, %c0_0] : memref<1x30xf32, #tpu.memory_space<vmem>>, vector<1x30xf32>
    %c0_1 = arith.constant 0 : index
    %c0_2 = arith.constant 0 : index
    %1 = vector.load %arg2[%c0_1, %c0_2] : memref<30x320xf32, #tpu.memory_space<vmem>>, vector<30x320xf32>
    %cst = arith.constant dense<0.000000e+00> : vector<1x320xf32>
    %2 = tpu.matmul %0, %1, %cst {dimension_numbers = #tpu.dot_dimension_numbers<[1], [0], [0], [1], [0, 0, 1, 1], [], []>} : vector<1x30xf32>, vector<30x320xf32>, vector<1x320xf32> -> vector<1x320xf32>
    %c0_3 = arith.constant 0 : index
    %c0_4 = arith.constant 0 : index
    %3 = vector.load %arg3[%c0_3, %c0_4] : memref<1x320xf32, #tpu.memory_space<vmem>>, vector<1x320xf32>
    %4 = arith.addf %2, %3 : vector<1x320xf32>
    %cst_5 = arith.constant 5.000000e-01 : f32
    %5 = vector.broadcast %cst_5 : f32 to vector<1x320xf32>
    %6 = arith.mulf %5, %4 : vector<1x320xf32>
    %cst_6 = arith.constant 0.707106769 : f32
    %7 = vector.broadcast %cst_6 : f32 to vector<1x320xf32>
    %8 = arith.mulf %4, %7 : vector<1x320xf32>
    %9 = math.erf %8 : vector<1x320xf32>
    %cst_7 = arith.constant 1.000000e+00 : f32
    %10 = vector.broadcast %cst_7 : f32 to vector<1x320xf32>
    %11 = arith.addf %10, %9 : vector<1x320xf32>
    %12 = arith.mulf %6, %11 : vector<1x320xf32>
    %c0_8 = arith.constant 0 : index
    %c0_9 = arith.constant 0 : index
    %13 = vector.load %arg4[%c0_8, %c0_9] : memref<320x128xf32, #tpu.memory_space<vmem>>, vector<320x128xf32>
    %cst_10 = arith.constant dense<0.000000e+00> : vector<1x128xf32>
    %14 = tpu.matmul %12, %13, %cst_10 {dimension_numbers = #tpu.dot_dimension_numbers<[1], [0], [0], [1], [0, 0, 1, 1], [], []>} : vector<1x320xf32>, vector<320x128xf32>, vector<1x128xf32> -> vector<1x128xf32>
    %c0_11 = arith.constant 0 : index
    %c0_12 = arith.constant 0 : index
    %15 = vector.load %arg5[%c0_11, %c0_12] : memref<1x128xf32, #tpu.memory_space<vmem>>, vector<1x128xf32>
    %16 = arith.addf %14, %15 : vector<1x128xf32>
    %cst_13 = arith.constant 5.000000e-01 : f32
    %17 = vector.broadcast %cst_13 : f32 to vector<1x128xf32>
    %18 = arith.mulf %17, %16 : vector<1x128xf32>
    %cst_14 = arith.constant 0.707106769 : f32
    %19 = vector.broadcast %cst_14 : f32 to vector<1x128xf32>
    %20 = arith.mulf %16, %19 : vector<1x128xf32>
    %21 = math.erf %20 : vector<1x128xf32>
    %cst_15 = arith.constant 1.000000e+00 : f32
    %22 = vector.broadcast %cst_15 : f32 to vector<1x128xf32>
    %23 = arith.addf %22, %21 : vector<1x128xf32>
    %24 = arith.mulf %18, %23 : vector<1x128xf32>
    %c0_16 = arith.constant 0 : index
    %c0_17 = arith.constant 0 : index
    %25 = vector.load %arg6[%c0_16, %c0_17] : memref<1x128xf32, #tpu.memory_space<vmem>>, vector<1x128xf32>
    tpu.vector_store %arg6[%c0_16, %c0_17], %24 {strides = array<i32>} : memref<1x128xf32, #tpu.memory_space<vmem>>, vector<1x128xf32>,
    return
  }
  func.func @transform_0(%arg0: i32) -> (i32, i32) {
    %c0_i32 = arith.constant 0 : i32
    %c0_i32_0 = arith.constant 0 : i32
    return %arg0, %c0_i32 : i32, i32
  }
  func.func @transform_1(%arg0: i32) -> (i32, i32) {
    %c0_i32 = arith.constant 0 : i32
    %c0_i32_0 = arith.constant 0 : i32
    %c0_i32_1 = arith.constant 0 : i32
    return %c0_i32, %c0_i32_0 : i32, i32
  }
  func.func @transform_2(%arg0: i32) -> (i32, i32) {
    %c0_i32 = arith.constant 0 : i32
    %c0_i32_0 = arith.constant 0 : i32
    %c0_i32_1 = arith.constant 0 : i32
    return %c0_i32, %c0_i32_0 : i32, i32
  }
  func.func @transform_3(%arg0: i32) -> (i32, i32) {
    %c0_i32 = arith.constant 0 : i32
    %c0_i32_0 = arith.constant 0 : i32
    %c0_i32_1 = arith.constant 0 : i32
    return %c0_i32, %c0_i32_0 : i32, i32
  }
  func.func @transform_4(%arg0: i32) -> (i32, i32) {
    %c0_i32 = arith.constant 0 : i32
    %c0_i32_0 = arith.constant 0 : i32
    %c0_i32_1 = arith.constant 0 : i32
    return %c0_i32, %c0_i32_0 : i32, i32
  }
  func.func @transform_5(%arg0: i32) -> (i32, i32) {
    %c0_i32 = arith.constant 0 : i32
    %c0_i32_0 = arith.constant 0 : i32
    return %arg0, %c0_i32 : i32, i32
  }
}

</mosaic_0001>

<bundles_post_ra>
// kernel: tpu_custom_call.1
= control target key start
LH: loop header
LB: loop body
LE: loop exit
PB: predicated region body
PF: predicated region fallthrough
CT: control target
= control target key end

     0   :  { %10 = vsyncpa [#allocation3], 0  ;;  %s844_s0 = inlined_call_operand.hbm [shape: f32[1,30], index: 0, kind: input, shape index: {}]   ;;  %s845_s1 = inlined_call_operand.hbm [shape: f32[30,320], index: 1, kind: input, shape index: {}]   ;;  %s846_s2 = inlined_call_operand.vmem [shape: f32[1,320], index: 2, kind: input, shape index: {}]   ;;  %s847_s3 = inlined_call_operand.hbm [shape: f32[320,128], index: 3, kind: input, shape index: {}]   ;;  %s848_s4 = inlined_call_operand.vmem [shape: f32[1,128], index: 4, kind: input, shape index: {}]   ;;  %s849_s5 = inlined_call_operand.hbm [shape: f32[1,128], index: 5, kind: output, shape index: {}]  }
   0x1   :  { %11 = vsyncpa [#allocation6], 0 }
   0x2   :  { %12 = vsyncpa [#allocation4], 0  ;;  %s727_s18 = smov [#allocation5]   ;;  %s633_s22 = scalar_lea.hbm %s845_s1, 1536 }
   0x3   :  { %s28_s19 = sshll.u32 %s727_s18, 4  ;;  %p634_p0 = scmp.ne.s32.totalorder %s845_s1, %s633_s22  ;;  %s29_s19 = int_to_ptr.vmem [resolvable:$true] %s28_s19 }
   0x4   :  { %p637_p1 = scmp.lt.u32.totalorder %s633_s22, %s845_s1 }
   0x6   :  { %p639_p2 = pnand %p637_p1, %p634_p0 }
   0x8   :  { %642 = shalt.err (!%p639_p2)
}
   0x9   :  { %s643_s27 = scalar_lea.vmem %s29_s19, 1536  ;;  %p648_p4 = scmp.lt.s32.totalorder %s29_s19, %s29_s19 }
   0xa   :  { %p644_p3 = scmp.ne.s32.totalorder %s29_s19, %s643_s27  ;;  %p649_p5 = scmp.lt.s32.totalorder %s643_s27, %s643_s27 }
   0xc   :  { %p650_p6 = por %p649_p5, %p648_p4 }
   0xe   :  { %p651_p7 = pnand %p650_p6, %p644_p3 }
  0x10   :  { %654 = shalt.err (!%p651_p7)
}
  0x11   :  { %s728_s28 = smov 384   ;;  %s729_s29 = smov 24  }
  0x12   :  { %34 = dma.hbm_to_vmem [thread:$0]  %s845_s1, 1536, %s29_s19, [#allocation6], %s728_s28, %s728_s28, %s729_s29  }
  0x13   :  { %s730_s7 = smov [#allocation2]   ;;  %s731_s9 = smov [#allocation7]  }
  0x14   :  { %s19_s8 = sshll.u32 %s730_s7, 4  ;;  %s42_s10 = sshll.u32 %s731_s9, 4  ;;  %s20_s8 = int_to_ptr.vmem [resolvable:$true] %s19_s8  ;;  %s43_s10 = int_to_ptr.vmem [resolvable:$true] %s42_s10 }
  0x15   :  { %s655_s13 = scalar_lea.hbm %s844_s0, 16 }
  0x16   :  { %p656_p8 = scmp.ne.s32.totalorder %s844_s0, %s655_s13  ;;  %p659_p9 = scmp.lt.u32.totalorder %s655_s13, %s844_s0 }
  0x18   :  { %p661_p10 = pnand %p659_p9, %p656_p8 }
  0x1a   :  { %664 = shalt.err (!%p661_p10)
}
  0x1b   :  { %s665_s1 = scalar_lea.vmem %s20_s8, 16  ;;  %s669_s18 = scalar_lea.vmem %s20_s8, 32 }
  0x1c   :  { %p666_p11 = scmp.ne.s32.totalorder %s20_s8, %s665_s1  ;;  %p670_p12 = scmp.lt.s32.totalorder %s20_s8, %s20_s8 }
  0x1d   :  { %p671_p13 = scmp.lt.s32.totalorder %s669_s18, %s665_s1 }
  0x1f   :  { %p672_p0 = por %p671_p13, %p670_p12 }
  0x21   :  { %p673_p1 = pnand %p672_p0, %p666_p11 }
  0x23   :  { %676 = shalt.err (!%p673_p1)
}
  0x24   :  { %22 = dma.hbm_to_vmem [thread:$0]  %s844_s0, 16, %s20_s8, [#allocation3]  }
  0x25   :  { %s677_s23 = scalar_lea.hbm %s847_s3, 5120 }
  0x26   :  { %p678_p2 = scmp.ne.s32.totalorder %s847_s3, %s677_s23  ;;  %p681_p3 = scmp.lt.u32.totalorder %s677_s23, %s847_s3 }
  0x28   :  { %p683_p4 = pnand %p681_p3, %p678_p2 }
  0x2a   :  { %686 = shalt.err (!%p683_p4)
}
  0x2b   :  { %s687_s28 = scalar_lea.vmem %s43_s10, 5120  ;;  %p692_p6 = scmp.lt.s32.totalorder %s43_s10, %s43_s10 }
  0x2c   :  { %p688_p5 = scmp.ne.s32.totalorder %s43_s10, %s687_s28  ;;  %p693_p7 = scmp.lt.s32.totalorder %s687_s28, %s687_s28 }
  0x2e   :  { %p694_p8 = por %p693_p7, %p692_p6 }
  0x30   :  { %p695_p9 = pnand %p694_p8, %p688_p5 }
  0x32   :  { %698 = shalt.err (!%p695_p9)
}
  0x33   :  { %s732_s0 = smov 128   ;;  %s733_s29 = smov 8  }
  0x34   :  { %48 = dma.hbm_to_vmem [thread:$0]  %s847_s3, 5120, %s43_s10, [#allocation6], %s732_s0, %s732_s0, %s733_s29  }
  0x35   :  { %721 = dma.done.wait [#allocation3], 16  }
  0x36   :  { %722 = vsyncadd [#allocation3], 4294967280 }
  0x37   :  { %723 = dma.done.wait [#allocation6], 6656  }
  0x38   :  { %724 = vsyncadd [#allocation6], 4294960640  ;;  %v734_v0 = vmov 0.0   ;;  %vm94_vm0 = vcmask 1045504   ;;  %v62_v1 = vld [vmem:[#allocation5 + $0x8] sm:$0xff]  ;;  %v65_v2 = vld [vmem:[#allocation5 + $0x20] sm:$0xff] }
  0x39   :  { %168 = vmatprep.mubr.f32.mxu1 %v734_v0  ;;  %v61_v3 = vld [vmem:[#allocation5] sm:$0xff]  ;;  %v552_v4 = vpack.c.bf16 %v65_v2, %v62_v1  ;;  %v64_v5 = vld [vmem:[#allocation5 + $0x18] sm:$0xff]  ;;  %v71_v7 = vld [vmem:[#allocation5 + $0x50] sm:$0x3f]  ;;  %vm735_vm1 = vmmov 1   ;;  %vm90_vm3 = vcmask 244736  }
  0x3a   :  { %v68_v6 = vld [vmem:[#allocation5 + $0x38] sm:$0xff]  ;;  %v554_v8 = vpack.c.bf16 %v64_v5, %v61_v3  ;;  %vm806_vm2 = vmpackc.low %vm94_vm0, %vm735_vm1  ;;  %v67_v11 = vld [vmem:[#allocation5 + $0x30] sm:$0xff]  ;;  %v736_v31 = vmov 0.0|0.0   ;;  %vm737_vm4 = vmmov 0   ;;  %vm301_vm5 = vcmask 523264   ;;  %s738_s9 = smov [#allocation8]  }
  0x3b   :  { %v556_v9 = vpack.c.bf16 %v71_v7, %v68_v6  ;;  %v70_v12 = vld [vmem:[#allocation5 + $0x48] sm:$0x3f]  ;;  %553 = vmatprep.subr.bf16.mxu1 %v552_v4  ;;  %v63_v13 = vld [vmem:[#allocation5 + $0x10] sm:$0xff]  ;;  %v276_v16 = vld [vmem:[#allocation7 + $0x80] sm:$0xff]  ;;  %s457_s10 = sshll.u32 %s738_s9, 4  ;;  %s458_s10 = int_to_ptr.vmem [resolvable:$true] %s457_s10 }
  0x3c   :  { %555 = vmatpush1.bf16.msra.mxu1 %v554_v8  ;;  %v559_v14 = vpack.c.bf16 %v70_v12, %v67_v11  ;;  %v66_v15 = vld [vmem:[#allocation5 + $0x28] sm:$0xff]  ;;  %v260_v19 = vld [vmem:[#allocation7] sm:$0xff]  ;;  %v278_v21 = vld [vmem:[#allocation7 + $0x90] sm:$0xff]  ;;  %s699_s11 = scalar_lea.vmem %s458_s10, 16  ;;  %s703_s12 = scalar_lea.vmem %s458_s10, 32 }
  0x3d   :  { %v277_v17 = vld [vmem:[#allocation7 + $0x88] sm:$0xff]  ;;  %558 = vmatprep.subr.msk.bf16.mxu1 %vm806_vm2, %v556_v9  ;;  %v279_v23 = vld [vmem:[#allocation7 + $0x98] sm:$0xff]  ;;  %v262_v24 = vld [vmem:[#allocation7 + $0x10] sm:$0xff]  ;;  %v563_v30 = vpack.c.bf16 %v66_v15, %v63_v13  ;;  %p700_p10 = scmp.ne.s32.totalorder %s458_s10, %s699_s11  ;;  %p704_p11 = scmp.lt.s32.totalorder %s458_s10, %s458_s10 }
  0x3e   :  { %v569_v18 = vpack.c.bf16 %v277_v17, %v276_v16  ;;  %v261_v20 = vld [vmem:[#allocation7 + $0x8] sm:$0xff]  ;;  %v263_v25 = vld [vmem:[#allocation7 + $0x18] sm:$0xff]  ;;  %v573_v26 = vpack.c.bf16 %v279_v23, %v278_v21  ;;  %v280_v27 = vld [vmem:[#allocation7 + $0xa0] sm:$0xff]  ;;  %p705_p12 = scmp.lt.s32.totalorder %s703_s12, %s699_s11 }
  0x3f   :  { %v571_v22 = vpack.c.bf16 %v261_v20, %v260_v19  ;;  %v281_v28 = vld [vmem:[#allocation7 + $0xa8] sm:$0xff]  ;;  %v60_v29 = vld [vmem:[#allocation2] sm:$0x1]  ;;  %v69_v32 = vld [vmem:[#allocation5 + $0x40] sm:$0xff]  ;;  %v575_v34 = vpack.c.bf16 %v263_v25, %v262_v24 }
  0x40   :  { %570 = vmatprep.subr.bf16.mxu0 %v569_v18  ;;  %561 = vmatpush1.bf16.msk.msra.mxu1 %vm806_vm2, %v559_v14  ;;  %v72_v33 = vld [vmem:[#allocation5 + $0x58] sm:$0x3f]  ;;  %v577_v35 = vpack.c.bf16 %v281_v28, %v280_v27  ;;  %v264_v36 = vld [vmem:[#allocation7 + $0x20] sm:$0xff]  ;;  %v265_v37 = vld [vmem:[#allocation7 + $0x28] sm:$0xff]  ;;  %v75_v18 = vlaneseq  ;;  %p706_p13 = por %p705_p12, %p704_p11 }
  0x41   :  { %572 = vmatpush3.bf16.msra.mxu0 %v571_v22  ;;  %562 = vmatprep.subr.bf16.mxu1 %v736_v31  ;;  %v566_v38 = vpack.c.bf16 %v72_v33, %v69_v32  ;;  %v579_v39 = vpack.c.bf16 %v265_v37, %v264_v36  ;;  %v282_v40 = vld [vmem:[#allocation7 + $0xb0] sm:$0xff]  ;;  %v283_v41 = vld [vmem:[#allocation7 + $0xb8] sm:$0xff]  ;;  %v284_v46 = vld [vmem:[#allocation7 + $0xc0] sm:$0xff] }
  0x42   :  { %574 = vmatprep.subr.bf16.mxu0 %v573_v26  ;;  %v581_v42 = vpack.c.bf16 %v283_v41, %v282_v40  ;;  %v266_v43 = vld [vmem:[#allocation7 + $0x30] sm:$0xff]  ;;  %v267_v44 = vld [vmem:[#allocation7 + $0x38] sm:$0xff]  ;;  %v285_v47 = vld [vmem:[#allocation7 + $0xc8] sm:$0xff]  ;;  %v76_v19 = vshrl.u32 %v75_v18, 7  ;;  %p707_p0 = pnand %p706_p13, %p700_p10 }
  0x43   :  { %469 = vmatmul.mubr.msk.f32.vlgmr.msra.gmra.mrb[0].mxu1 %vm90_vm3, %v60_v29  ;;  %v583_v45 = vpack.c.bf16 %v267_v44, %v266_v43  ;;  %v585_v48 = vpack.c.bf16 %v285_v47, %v284_v46  ;;  %v268_v49 = vld [vmem:[#allocation7 + $0x40] sm:$0xff]  ;;  %v269_v50 = vld [vmem:[#allocation7 + $0x48] sm:$0xff]  ;;  %v286_v52 = vld [vmem:[#allocation7 + $0xd0] sm:$0xff] }
  0x44   :  { %564 = vmatpush3.bf16.msra.mxu1 %v563_v30  ;;  %530 = vmatprep.mubr.msk.f32.mxu1 %vm737_vm4, %v734_v0  ;;  %v587_v51 = vpack.c.bf16 %v269_v50, %v268_v49  ;;  %v287_v53 = vld [vmem:[#allocation7 + $0xd8] sm:$0xff]  ;;  %v270_v55 = vld [vmem:[#allocation7 + $0x50] sm:$0xff]  ;;  %v292_v58 = vld [vmem:[#allocation7 + $0x100] sm:$0xff]  ;;  %v77_v20 = vsub.s32 0, %v76_v19  ;;  %v81_v22 = vsub.s32 1, %v76_v19  ;;  %v85_v28 = vsub.s32 2, %v76_v19 }
  0x45   :  { %565 = vmatprep.subr.bf16.mxu1 %v736_v31  ;;  %576 = vmatpush3.bf16.msra.mxu0 %v575_v34  ;;  %v589_v54 = vpack.c.bf16 %v287_v53, %v286_v52  ;;  %v271_v56 = vld [vmem:[#allocation7 + $0x58] sm:$0xff]  ;;  %v293_v59 = vld [vmem:[#allocation7 + $0x108] sm:$0xff]  ;;  %v288_v61 = vld [vmem:[#allocation7 + $0xe0] sm:$0xff] }
  0x46   :  { %578 = vmatprep.subr.bf16.mxu0 %v577_v35  ;;  %v591_v57 = vpack.c.bf16 %v271_v56, %v270_v55  ;;  %v602_v60 = vpack.c.bf16 %v293_v59, %v292_v58  ;;  %v289_v62 = vld [vmem:[#allocation7 + $0xe8] sm:$0xff]  ;;  %v294_v3 = vld [vmem:[#allocation7 + $0x110] sm:$0xff]  ;;  %v295_v4 = vld [vmem:[#allocation7 + $0x118] sm:$0xff] }
  0x47   :  { %v593_v63 = vpack.c.bf16 %v289_v62, %v288_v61  ;;  %v273_v1 = vld [vmem:[#allocation7 + $0x68] sm:$0xff]  ;;  %v605_v5 = vpack.c.bf16 %v295_v4, %v294_v3  ;;  %v290_v6 = vld [vmem:[#allocation7 + $0xf0] sm:$0xff]  ;;  %v291_v7 = vld [vmem:[#allocation7 + $0xf8] sm:$0xff] }
  0x48   :  { %568 = vmatpush3.bf16.msk.msra.mxu1 %vm806_vm2, %v566_v38  ;;  %v597_v8 = vpack.c.bf16 %v291_v7, %v290_v6  ;;  %v274_v9 = vld [vmem:[#allocation7 + $0x70] sm:$0xff]  ;;  %v275_v10 = vld [vmem:[#allocation7 + $0x78] sm:$0xff]  ;;  %v296_v12 = vld [vmem:[#allocation7 + $0x120] sm:$0xff] }
  0x49   :  { %580 = vmatpush3.bf16.msra.mxu0 %v579_v39  ;;  %601 = vmatprep.subr.bf16.mxu1 %v736_v31  ;;  %v599_v11 = vpack.c.bf16 %v275_v10, %v274_v9  ;;  %v297_v13 = vld [vmem:[#allocation7 + $0x128] sm:$0xff]  ;;  %v298_v15 = vld [vmem:[#allocation7 + $0x130] sm:$0xff]  ;;  %v299_v16 = vld [vmem:[#allocation7 + $0x138] sm:$0xff] }
  0x4a   :  { %582 = vmatprep.subr.bf16.mxu0 %v581_v42  ;;  %v608_v14 = vpack.c.bf16 %v297_v13, %v296_v12  ;;  %v611_v17 = vpack.c.bf16 %v299_v16, %v298_v15  ;;  %v73_v21 = vld [vmem:[%s846_s2] sm:$0x7] }
  0x4b   :  { %531 = vmatmul.mubr.msk.f32.vlgmr.msra.gmra.mrb[2].mxu1 %vm90_vm3, %v60_v29  ;;  %v78_v23 = vrot.slane %v73_v21, %v77_v20  ;;  %v82_v24 = vrot.slane %v73_v21, %v81_v22  ;;  %v86_v32 = vrot.slane %v73_v21, %v85_v28 }
  0x4c   :  { %549 = vmatprep.mubr.msk.f32.mxu1 %vm737_vm4, %v734_v0  ;;  %v272_v0 = vld [vmem:[#allocation7 + $0x60] sm:$0xff]  ;;  %603 = vmatpush3.bf16.msra.mxu1 %v602_v60 }
  0x4d   :  { %584 = vmatpush3.bf16.msra.mxu0 %v583_v45  ;;  %v595_v2 = vpack.c.bf16 %v273_v1, %v272_v0  ;;  %604 = vmatprep.subr.bf16.mxu1 %v736_v31 }
  0x4e   :  { %586 = vmatprep.subr.bf16.mxu0 %v585_v48 }
  0x50   :  { %606 = vmatpush3.bf16.msra.mxu1 %v605_v5 }
  0x51   :  { %588 = vmatpush3.bf16.msra.mxu0 %v587_v51  ;;  %607 = vmatprep.subr.bf16.mxu1 %v736_v31  ;;  %v300_v51 = vld [vmem:[%s848_s4] sm:$0x1] }
  0x52   :  { %590 = vmatprep.subr.bf16.mxu0 %v589_v54 }
  0x54   :  { %609 = vmatpush3.bf16.msra.mxu1 %v608_v14 }
  0x55   :  { %592 = vmatpush3.bf16.msra.mxu0 %v591_v57  ;;  %610 = vmatprep.subr.bf16.mxu1 %v736_v31 }
  0x56   :  { %594 = vmatprep.subr.bf16.mxu0 %v593_v63 }
  0x58   :  { %612 = vmatpush3.bf16.msra.mxu1 %v611_v17 }
  0x59   :  { %596 = vmatpush3.bf16.msra.mxu0 %v595_v2 }
  0x5a   :  { %598 = vmatprep.subr.bf16.mxu0 %v597_v8 }
  0x5d   :  { %600 = vmatpush3.bf16.msra.mxu0 %v599_v11 }
 0x116   :  { %v170_v25 = vpop.f32.mrb[0].mxu1 }
 0x117   :  { %v171_v26 = vadd.f32 %v170_v25, %v78_v23  ;;  %v172_v27 = vpop.f32.mrb[1].mxu1 }
 0x118   :  { %v173_v29 = vadd.f32 %v172_v27, %v82_v24 }
 0x119   :  { %v248_v30 = vmul.f32 0.70710677, %v171_v26  ;;  %v245_v42 = vmul.f32 0.5, %v171_v26 }
 0x11a   :  { %v249_v31 = vmul.f32 0.70710677, %v173_v29  ;;  %v246_v40 = vmul.f32 0.5, %v173_v29 }
 0x11b   :  { %625 = verf.f32 %v248_v30 }
 0x11c   :  { %627 = verf.f32 %v249_v31 }
 0x11e   :  { %v241_v33 = vpop.f32.mrb[2].mxu1 }
 0x11f   :  { %v242_v34 = vadd.f32 %v241_v33, %v86_v32  ;;  %v532_v35 = vpop.f32.mrb[3].mxu1 }
 0x121   :  { %v250_v36 = vmul.f32 0.70710677, %v242_v34  ;;  %v247_v46 = vmul.f32 0.5, %v242_v34 }
 0x123   :  { %629 = verf.f32 %v250_v36 }
 0x125   :  { %v626_v37 = vpop.eup %625 }
 0x126   :  { %v628_v38 = vpop.eup %627  ;;  %v254_v39 = vadd.f32 1.0, %v626_v37 }
 0x127   :  { %v255_v41 = vadd.f32 1.0, %v628_v38 }
 0x128   :  { %v257_v44 = vmul.f32 %v254_v39, %v245_v42 }
 0x129   :  { %v258_v43 = vmul.f32 %v255_v41, %v246_v40 }
 0x12b   :  { %369 = vmatprep.mubr.f32.mxu0 %v258_v43 }
 0x12c   :  { %370 = vmatmul.mubr.f32.vlgmr.msra.gmra.mrb[0].mxu0 %v257_v44 }
 0x12d   :  { %v630_v45 = vpop.eup %629 }
 0x12e   :  { %v256_v47 = vadd.f32 1.0, %v630_v45 }
 0x130   :  { %v259_v48 = vmul.f32 %v256_v47, %v247_v46 }
 0x132   :  { %550 = vmatmul.mubr.msk.f32.vlgmr.msra.gmra.mrb[4].mxu1 %vm301_vm5, %v259_v48 }
 0x1ff   :  { %v510_v49 = vpop.f32.mrb[0].mxu0 }
 0x200   :  { %v511_v50 = vpop.f32.mrb[1].mxu0 }
 0x201   :  { %v512_v52 = vadd.f32 %v511_v50, %v510_v49 }
 0x203   :  { %v372_v53 = vadd.f32 %v512_v52, %v300_v51 }
 0x205   :  { %v441_v54 = vpop.f32.mrb[4].mxu1 }
 0x206   :  { %v442_v55 = vadd.f32 %v441_v54, %v372_v53  ;;  %v551_v56 = vpop.f32.mrb[5].mxu1 }
 0x208   :  { %v446_v57 = vmul.f32 0.70710677, %v442_v55  ;;  %v445_v59 = vmul.f32 0.5, %v442_v55 }
 0x20a   :  { %631 = verf.f32 %v446_v57 }
 0x214   :  { %v632_v58 = vpop.eup %631 }
 0x215   :  { %v448_v60 = vadd.f32 1.0, %v632_v58 }
 0x217   :  { %v449_v61 = vmul.f32 %v448_v60, %v445_v59 }
 0x219   :  { %450 = vst [vmem:[#allocation8] sm:$0x1] %v449_v61 }
 0x21a   :  { %710 = shalt.err (!%p707_p0)
}
 0x21b   :  { %s711_s14 = scalar_lea.hbm %s849_s5, 16 }
 0x21c   :  { %p712_p1 = scmp.ne.s32.totalorder %s849_s5, %s711_s14  ;;  %p715_p2 = scmp.lt.u32.totalorder %s711_s14, %s849_s5 }
 0x21e   :  { %p717_p3 = pnand %p715_p2, %p712_p1 }
 0x220   :  { %720 = shalt.err (!%p717_p3)
}
 0x221   :  { %460 = dma.vmem_to_hbm [thread:$0]  %s458_s10, 16, %s849_s5, [#allocation4]  }
 0x222   :  { %725 = dma.done.wait [#allocation4], 16  }
 0x223   :  { %726 = vsyncadd [#allocation4], 4294967280 }
 0x224   :  { %464 = vsyncpa [#allocation3], 1 }
 0x225   :  { %465 = vsyncpa [#allocation6], 1 }
 0x226   :  { %466 = vsyncpa [#allocation4], 1 }

</bundles_post_ra>
